<compile_context>
chip_gen: v7x
topology: tpu7x:2x2x1
jax: 0.10.0
libtpu: 0.0.40
codegen_flags: <defaults>
</compile_context>

<pallas_src>
import functools

import jax
import jax.numpy as jnp
from jax import lax
from jax.experimental import pallas as pl
from jax.experimental.pallas import tpu as pltpu

STATE_SPACE_LENGTH = 64
ACTION_SPACE_LENGTH = 65
H1, H2, H3 = 128, 256, 128
NEG_SLOPE = 0.01  # F.leaky_relu default

HEAD_PAD = 128                 # lane-dense padded head width
V_COL = ACTION_SPACE_LENGTH    # lane 65: value head

DEFAULT_MATMUL_DTYPE = jnp.bfloat16  # MXU-native on v6e/v7x; f32 accumulation
_VMEM_LIMIT = 32 * 1024 * 1024       # above v5e's 16 MiB scoped default, safe on v7x (64 MiB phys)


def _round_up(n, m):
    return ((n + m - 1) // m) * m


def _leaky_relu(x):
    return jnp.where(x > 0, x, NEG_SLOPE * x)


def _nbytes(a):
    return int(a.size) * a.dtype.itemsize


# ----------------------------------------------------------------------------
# Single pass: trunk MLP + fused (A | V) head, tiled over the batch.
# Outputs: head (A+V in lanes 0..64, lane-dense 128-wide store) and a tiny
# per-tile partial sum of A (for the global mean).
# ----------------------------------------------------------------------------
def qnet_fused_kernel(x_ref,
                      w1_ref, b1_ref,
                      w2_ref, b2_ref,
                      w3_ref, b3_ref,
                      wh_ref, bh_ref,
                      head_ref, psum_ref,
                      *, batch, tile):
    i = pl.program_id(0)
    cdt = w1_ref.dtype  # matmul operand dtype (bf16 or f32); accumulation is f32

    # x_ref is already in the compute dtype (cast once in the wrapper).
    h = jnp.dot(x_ref[...], w1_ref[...],
                preferred_element_type=jnp.float32) + b1_ref[...]
    h = _leaky_relu(h)

    h = jnp.dot(h.astype(cdt), w2_ref[...],
                preferred_element_type=jnp.float32) + b2_ref[...]
    h = _leaky_relu(h)

    h = jnp.dot(h.astype(cdt), w3_ref[...],
                preferred_element_type=jnp.float32) + b3_ref[...]
    h = _leaky_relu(h)

    # Fused head: lanes 0..64 = A, lane 65 = V, lanes 66..127 = 0.
    head = jnp.dot(h.astype(cdt), wh_ref[...],
                   preferred_element_type=jnp.float32) + bh_ref[...]  # (TB, 128) f32

    col = lax.broadcasted_iota(jnp.int32, head.shape, 1)
    row = lax.broadcasted_iota(jnp.int32, head.shape, 0)

    # Masked per-tile sum of A: only the 65 action lanes, only true batch rows
    # (rows added by batch padding are excluded from the global mean).
    is_action = col < ACTION_SPACE_LENGTH
    is_valid = (row + i * tile) < batch
    a_only = jnp.where(jnp.logical_and(is_action, is_valid), head, 0.0)
    tile_sum = jnp.sum(a_only)  # scalar f32

    # Broadcast V (lane 65) across all lanes and store A + V lane-dense.
    v = jnp.sum(jnp.where(col == V_COL, head, 0.0), axis=-1, keepdims=True)  # (TB, 1)
    head_ref[...] = head + v  # lanes >= 65 are garbage; sliced off in the wrapper

    # Tiny per-tile partial-sum block: element [0,0] = tile_sum, rest zero.
    r8 = lax.broadcasted_iota(jnp.int32, (8, HEAD_PAD), 0)
    c8 = lax.broadcasted_iota(jnp.int32, (8, HEAD_PAD), 1)
    psum_ref[...] = jnp.where(jnp.logical_and(r8 == 0, c8 == 0), tile_sum, 0.0)


# ----------------------------------------------------------------------------
# Parameter preparation (hoisted out of the forward call: do this once per
# parameter update, NOT per inference call).
# ----------------------------------------------------------------------------
def prepare_params(params, matmul_dtype=DEFAULT_MATMUL_DTYPE):
    """Build the fused 128-lane head and cast matmul operands once."""
    f32 = jnp.float32
    wa, ba = params["wa"].astype(f32), params["ba"].astype(f32)
    wv, bv = params["wv"].astype(f32), params["bv"].astype(f32)

    # Fused head weight/bias: columns 0..64 = A head, column 65 = V head,
    # columns 66..127 must stay exactly zero.
    w_head = jnp.zeros((H3, HEAD_PAD), f32).at[:, :ACTION_SPACE_LENGTH].set(wa)
    w_head = w_head.at[:, V_COL].set(wv[:, 0])
    b_head = jnp.zeros((1, HEAD_PAD), f32).at[:, :ACTION_SPACE_LENGTH].set(ba)
    b_head = b_head.at[:, V_COL].set(bv[:, 0])

    cdt = matmul_dtype
    return dict(
        _prepared=True,
        matmul_dtype=cdt,
        w1=params["w1"].astype(cdt), b1=params["b1"].astype(f32),
        w2=params["w2"].astype(cdt), b2=params["b2"].astype(f32),
        w3=params["w3"].astype(cdt), b3=params["b3"].astype(f32),
        wh=w_head.astype(cdt), bh=b_head,
    )


def _choose_tiles(batch, tile_b, min_tiles):
    """Pick batch tile size (multiple of 8) and padded batch.

    Keeps tiles large (amortize per-step overhead / DMA setup on v5e/v6e) but
    splits into >= min_tiles balanced tiles when the batch allows it, so the
    "parallel" grid axis can shard across both v7x TensorCores.
    """
    b8 = _round_up(batch, 8)
    tb = min(_round_up(tile_b, 8), b8)
    if min_tiles > 1 and b8 >= min_tiles * 8:
        tb = min(tb, _round_up(pl.cdiv(b8, min_tiles), 8))
    b_pad = _round_up(b8, tb)
    return tb, b_pad, b_pad // tb


# ----------------------------------------------------------------------------
# Forward wrapper
# ----------------------------------------------------------------------------
def qnet_forward(x, params, *, tile_b=1024, min_tiles=2, matmul_dtype=None):
    """x: (B, STATE_SPACE_LENGTH). params: raw dict (wa/ba/wv/bv/...) or prepare_params() output."""
    f32 = jnp.float32
    if not params.get("_prepared", False):
        params = prepare_params(
            params, matmul_dtype if matmul_dtype is not None else DEFAULT_MATMUL_DTYPE)

    cdt = params["matmul_dtype"]
    B, feat = x.shape
    assert feat == STATE_SPACE_LENGTH

    TB, B_pad, num_tiles = _choose_tiles(B, tile_b, min_tiles)

    # Cast x once to the matmul operand dtype (halves x DMA for bf16) and pad.
    x_c = x.astype(cdt)
    if B_pad != B:
        x_c = jnp.pad(x_c, ((0, B_pad - B), (0, 0)))

    w1, b1 = params["w1"], params["b1"]
    w2, b2 = params["w2"], params["b2"]
    w3, b3 = params["w3"], params["b3"]
    wh, bh = params["wh"], params["bh"]

    vmem = pltpu.MemorySpace.VMEM

    def resident(arr):  # constant index_map -> DMA'd once, VMEM-resident across the grid
        return pl.BlockSpec(arr.shape, lambda i: (0, 0), memory_space=vmem)

    flops = 2 * B_pad * (STATE_SPACE_LENGTH * H1 + H1 * H2 + H2 * H3 + H3 * HEAD_PAD)
    bytes_accessed = (
        _nbytes(x_c)
        + sum(_nbytes(a) for a in (w1, b1, w2, b2, w3, b3, wh, bh))
        + B_pad * HEAD_PAD * 4            # head output store
        + num_tiles * 8 * HEAD_PAD * 4    # per-tile partial sums
    )
    cost = pl.CostEstimate(flops=flops, transcendentals=0, bytes_accessed=bytes_accessed)

    head_pad, psums = pl.pallas_call(
        functools.partial(qnet_fused_kernel, batch=B, tile=TB),
        out_shape=(
            jax.ShapeDtypeStruct((B_pad, HEAD_PAD), f32),
            jax.ShapeDtypeStruct((num_tiles * 8, HEAD_PAD), f32),
        ),
        grid=(num_tiles,),
        in_specs=[
            pl.BlockSpec((TB, STATE_SPACE_LENGTH), lambda i: (i, 0), memory_space=vmem),
            resident(w1), resident(b1),
            resident(w2), resident(b2),
            resident(w3), resident(b3),
            resident(wh), resident(bh),
        ],
        out_specs=(
            pl.BlockSpec((TB, HEAD_PAD), lambda i: (i, 0), memory_space=vmem),
            pl.BlockSpec((8, HEAD_PAD), lambda i: (i, 0), memory_space=vmem),
        ),
        compiler_params=pltpu.CompilerParams(
            dimension_semantics=("parallel",),   # megacore-shardable on v7x
            vmem_limit_bytes=_VMEM_LIMIT,
        ),
        cost_estimate=cost,
    )(x_c, w1, b1, w2, b2, w3, b3, wh, bh)

    # Global A.mean() from num_tiles scalar partial sums (tiny XLA reduction),
    # then a fused slice + subtract: out = (A + V) - mean, true rows / 65 lanes only.
    a_mean = jnp.sum(psums) / jnp.float32(B * ACTION_SPACE_LENGTH)
    return head_pad[:B, :ACTION_SPACE_LENGTH] - a_mean


# ----------------------------------------------------------------------------
# Deterministic synthetic init (PyTorch-default-style uniform) and a JAX reference.
# ----------------------------------------------------------------------------
def init_params(key):
    """Weights stored as (in, out) = W^T; biases as (1, out)."""
    ks = jax.random.split(key, 10)

    def lin(kw, kb, fan_in, fan_out):
        bound = 1.0 / jnp.sqrt(jnp.float32(fan_in))
        w = jax.random.uniform(kw, (fan_in, fan_out), jnp.float32, -bound, bound)
        b = jax.random.uniform(kb, (1, fan_out), jnp.float32, -bound, bound)
        return w, b

    w1, b1 = lin(ks[0], ks[1], STATE_SPACE_LENGTH, H1)
    w2, b2 = lin(ks[2], ks[3], H1, H2)
    w3, b3 = lin(ks[4], ks[5], H2, H3)
    wa, ba = lin(ks[6], ks[7], H3, ACTION_SPACE_LENGTH)
    wv, bv = lin(ks[8], ks[9], H3, 1)
    return dict(w1=w1, b1=b1, w2=w2, b2=b2, w3=w3, b3=b3,
                wa=wa, ba=ba, wv=wv, bv=bv)


def qnet_reference(x, p):
    h = jax.nn.leaky_relu(x @ p["w1"] + p["b1"], NEG_SLOPE)
    h = jax.nn.leaky_relu(h @ p["w2"] + p["b2"], NEG_SLOPE)
    h = jax.nn.leaky_relu(h @ p["w3"] + p["b3"], NEG_SLOPE)
    a = h @ p["wa"] + p["ba"]
    v = h @ p["wv"] + p["bv"]
    return v + a - jnp.mean(a)


if __name__ == "__main__":
    key = jax.random.PRNGKey(0)
    kp, kx1, kx2 = jax.random.split(key, 3)
    params = init_params(kp)

    # ---- f32 operand path: exact parity with the f32 reference ----
    prep_f32 = prepare_params(params, matmul_dtype=jnp.float32)

    # Small batch (pads to one 8-row tile).
    B1 = 2
    x1 = jax.random.normal(kx1, (B1, STATE_SPACE_LENGTH), jnp.float32)
    out1 = jax.block_until_ready(qnet_forward(x1, prep_f32))
    ref1 = qnet_reference(x1, params)
    assert out1.shape == (B1, ACTION_SPACE_LENGTH)
    assert jnp.allclose(out1, ref1, atol=1e-4, rtol=1e-4), "mismatch vs JAX reference (B=2, f32)"

    # Multi-tile batch with a ragged tail: exercises the batch grid, padded-row
    # masking, and the cross-tile global A.mean() via per-tile partial sums.
    B2 = 19
    x2 = jax.random.normal(kx2, (B2, STATE_SPACE_LENGTH), jnp.float32)
    out2 = jax.block_until_ready(qnet_forward(x2, prep_f32, tile_b=8))
    ref2 = qnet_reference(x2, params)
    assert out2.shape == (B2, ACTION_SPACE_LENGTH)
    assert jnp.allclose(out2, ref2, atol=1e-4, rtol=1e-4), "mismatch vs JAX reference (B=19, f32)"

    # ---- default fast path (bf16 MXU operands, f32 accumulation) ----
    prep_bf16 = prepare_params(params)  # DEFAULT_MATMUL_DTYPE = bfloat16
    out3 = jax.block_until_ready(qnet_forward(x2, prep_bf16, tile_b=8))
    assert out3.shape == (B2, ACTION_SPACE_LENGTH)
    assert jnp.allclose(out3, ref2, atol=5e-2, rtol=5e-2), "mismatch vs JAX reference (B=19, bf16)"

    print("KERNEL_OK")
</pallas_src>

<mosaic_0001>
module attributes {stable_mosaic.version = 11 : i64} {
  func.func @qnet_fused_kernel(%arg0: i32, %arg1: memref<8x64xf32, #tpu.memory_space<vmem>>, %arg2: memref<64x128xf32, #tpu.memory_space<vmem>>, %arg3: memref<1x128xf32, #tpu.memory_space<vmem>>, %arg4: memref<128x256xf32, #tpu.memory_space<vmem>>, %arg5: memref<1x256xf32, #tpu.memory_space<vmem>>, %arg6: memref<256x128xf32, #tpu.memory_space<vmem>>, %arg7: memref<1x128xf32, #tpu.memory_space<vmem>>, %arg8: memref<128x128xf32, #tpu.memory_space<vmem>>, %arg9: memref<1x128xf32, #tpu.memory_space<vmem>>, %arg10: memref<8x128xf32, #tpu.memory_space<vmem>>, %arg11: memref<8x128xf32, #tpu.memory_space<vmem>>) attributes {dimension_semantics = [#tpu.dimension_semantics<parallel>], iteration_bounds = array<i64: 1>, scalar_prefetch = 0 : i64, scratch_operands = 0 : i64, tpu.core_type = #tpu.core_type<tc>, window_params = [{transform_indices = @transform_0, window_bounds = array<i64: 8, 64>}, {pipeline_mode = #tpu.pipeline_mode<synchronous>, transform_indices = @transform_1, window_bounds = array<i64: 64, 128>}, {pipeline_mode = #tpu.pipeline_mode<synchronous>, transform_indices = @transform_2, window_bounds = array<i64: 1, 128>}, {pipeline_mode = #tpu.pipeline_mode<synchronous>, transform_indices = @transform_3, window_bounds = array<i64: 128, 256>}, {pipeline_mode = #tpu.pipeline_mode<synchronous>, transform_indices = @transform_4, window_bounds = array<i64: 1, 256>}, {pipeline_mode = #tpu.pipeline_mode<synchronous>, transform_indices = @transform_5, window_bounds = array<i64: 256, 128>}, {pipeline_mode = #tpu.pipeline_mode<synchronous>, transform_indices = @transform_6, window_bounds = array<i64: 1, 128>}, {pipeline_mode = #tpu.pipeline_mode<synchronous>, transform_indices = @transform_7, window_bounds = array<i64: 128, 128>}, {pipeline_mode = #tpu.pipeline_mode<synchronous>, transform_indices = @transform_8, window_bounds = array<i64: 1, 128>}, {transform_indices = @transform_9, window_bounds = array<i64: 8, 128>}, {transform_indices = @transform_10, window_bounds = array<i64: 8, 128>}]} {
    %c0 = arith.constant 0 : index
    %c0_0 = arith.constant 0 : index
    %0 = vector.load %arg1[%c0, %c0_0] : memref<8x64xf32, #tpu.memory_space<vmem>>, vector<8x64xf32>
    %c0_1 = arith.constant 0 : index
    %c0_2 = arith.constant 0 : index
    %1 = vector.load %arg2[%c0_1, %c0_2] : memref<64x128xf32, #tpu.memory_space<vmem>>, vector<64x128xf32>
    %cst = arith.constant dense<0.000000e+00> : vector<8x128xf32>
    %2 = tpu.matmul %0, %1, %cst {dimension_numbers = #tpu.dot_dimension_numbers<[1], [0], [0], [1], [0, 0, 1, 1], [], []>} : vector<8x64xf32>, vector<64x128xf32>, vector<8x128xf32> -> vector<8x128xf32>
    %c0_3 = arith.constant 0 : index
    %c0_4 = arith.constant 0 : index
    %3 = vector.load %arg3[%c0_3, %c0_4] : memref<1x128xf32, #tpu.memory_space<vmem>>, vector<1x128xf32>
    %4 = vector.broadcast %3 : vector<1x128xf32> to vector<8x128xf32>
    %5 = arith.addf %2, %4 : vector<8x128xf32>
    %cst_5 = arith.constant 0.000000e+00 : f32
    %6 = vector.broadcast %cst_5 : f32 to vector<8x128xf32>
    %7 = arith.cmpf ogt, %5, %6 : vector<8x128xf32>
    %cst_6 = arith.constant 0.00999999977 : f32
    %8 = vector.broadcast %cst_6 : f32 to vector<8x128xf32>
    %9 = arith.mulf %8, %5 : vector<8x128xf32>
    %10 = arith.select %7, %5, %9 : vector<8x128xi1>, vector<8x128xf32>
    %c0_7 = arith.constant 0 : index
    %c0_8 = arith.constant 0 : index
    %11 = vector.load %arg4[%c0_7, %c0_8] : memref<128x256xf32, #tpu.memory_space<vmem>>, vector<128x256xf32>
    %cst_9 = arith.constant dense<0.000000e+00> : vector<8x256xf32>
    %12 = tpu.matmul %10, %11, %cst_9 {dimension_numbers = #tpu.dot_dimension_numbers<[1], [0], [0], [1], [0, 0, 1, 1], [], []>} : vector<8x128xf32>, vector<128x256xf32>, vector<8x256xf32> -> vector<8x256xf32>
    %c0_10 = arith.constant 0 : index
    %c0_11 = arith.constant 0 : index
    %13 = vector.load %arg5[%c0_10, %c0_11] : memref<1x256xf32, #tpu.memory_space<vmem>>, vector<1x256xf32>
    %14 = vector.broadcast %13 : vector<1x256xf32> to vector<8x256xf32>
    %15 = arith.addf %12, %14 : vector<8x256xf32>
    %cst_12 = arith.constant 0.000000e+00 : f32
    %16 = vector.broadcast %cst_12 : f32 to vector<8x256xf32>
    %17 = arith.cmpf ogt, %15, %16 : vector<8x256xf32>
    %cst_13 = arith.constant 0.00999999977 : f32
    %18 = vector.broadcast %cst_13 : f32 to vector<8x256xf32>
    %19 = arith.mulf %18, %15 : vector<8x256xf32>
    %20 = arith.select %17, %15, %19 : vector<8x256xi1>, vector<8x256xf32>
    %c0_14 = arith.constant 0 : index
    %c0_15 = arith.constant 0 : index
    %21 = vector.load %arg6[%c0_14, %c0_15] : memref<256x128xf32, #tpu.memory_space<vmem>>, vector<256x128xf32>
    %cst_16 = arith.constant dense<0.000000e+00> : vector<8x128xf32>
    %22 = tpu.matmul %20, %21, %cst_16 {dimension_numbers = #tpu.dot_dimension_numbers<[1], [0], [0], [1], [0, 0, 1, 1], [], []>} : vector<8x256xf32>, vector<256x128xf32>, vector<8x128xf32> -> vector<8x128xf32>
    %c0_17 = arith.constant 0 : index
    %c0_18 = arith.constant 0 : index
    %23 = vector.load %arg7[%c0_17, %c0_18] : memref<1x128xf32, #tpu.memory_space<vmem>>, vector<1x128xf32>
    %24 = vector.broadcast %23 : vector<1x128xf32> to vector<8x128xf32>
    %25 = arith.addf %22, %24 : vector<8x128xf32>
    %cst_19 = arith.constant 0.000000e+00 : f32
    %26 = vector.broadcast %cst_19 : f32 to vector<8x128xf32>
    %27 = arith.cmpf ogt, %25, %26 : vector<8x128xf32>
    %cst_20 = arith.constant 0.00999999977 : f32
    %28 = vector.broadcast %cst_20 : f32 to vector<8x128xf32>
    %29 = arith.mulf %28, %25 : vector<8x128xf32>
    %30 = arith.select %27, %25, %29 : vector<8x128xi1>, vector<8x128xf32>
    %c0_21 = arith.constant 0 : index
    %c0_22 = arith.constant 0 : index
    %31 = vector.load %arg8[%c0_21, %c0_22] : memref<128x128xf32, #tpu.memory_space<vmem>>, vector<128x128xf32>
    %cst_23 = arith.constant dense<0.000000e+00> : vector<8x128xf32>
    %32 = tpu.matmul %30, %31, %cst_23 {dimension_numbers = #tpu.dot_dimension_numbers<[1], [0], [0], [1], [0, 0, 1, 1], [], []>} : vector<8x128xf32>, vector<128x128xf32>, vector<8x128xf32> -> vector<8x128xf32>
    %c0_24 = arith.constant 0 : index
    %c0_25 = arith.constant 0 : index
    %33 = vector.load %arg9[%c0_24, %c0_25] : memref<1x128xf32, #tpu.memory_space<vmem>>, vector<1x128xf32>
    %34 = vector.broadcast %33 : vector<1x128xf32> to vector<8x128xf32>
    %35 = arith.addf %32, %34 : vector<8x128xf32>
    %36 = tpu.iota {dimensions = array<i32: 1>} : vector<8x128xi32>
    %37 = tpu.iota {dimensions = array<i32: 0>} : vector<8x128xi32>
    %c65_i32 = arith.constant 65 : i32
    %38 = vector.broadcast %c65_i32 : i32 to vector<8x128xi32>
    %39 = arith.cmpi slt, %36, %38 : vector<8x128xi32>
    %c8_i32 = arith.constant 8 : i32
    %40 = arith.muli %arg0, %c8_i32 : i32
    %41 = vector.broadcast %40 : i32 to vector<8x128xi32>
    %42 = arith.addi %37, %41 : vector<8x128xi32>
    %c2_i32 = arith.constant 2 : i32
    %43 = vector.broadcast %c2_i32 : i32 to vector<8x128xi32>
    %44 = arith.cmpi slt, %42, %43 : vector<8x128xi32>
    %45 = arith.andi %39, %44 : vector<8x128xi1>
    %cst_26 = arith.constant 0.000000e+00 : f32
    %46 = vector.broadcast %cst_26 : f32 to vector<8x128xf32>
    %47 = arith.select %45, %35, %46 : vector<8x128xi1>, vector<8x128xf32>
    %48 = vector.shape_cast %47 : vector<8x128xf32> to vector<1x8x128xf32>
    %cst_27 = arith.constant dense<0.000000e+00> : vector<1xf32>
    %49 = vector.multi_reduction <add>, %48, %cst_27 [1, 2] : vector<1x8x128xf32> to vector<1xf32>
    %50 = vector.shape_cast %49 : vector<1xf32> to vector<1x1x1xf32>
    %51 = vector.extract %50[0, 0, 0] : f32 from vector<1x1x1xf32>
    %c65_i32_28 = arith.constant 65 : i32
    %52 = vector.broadcast %c65_i32_28 : i32 to vector<8x128xi32>
    %53 = arith.cmpi eq, %36, %52 : vector<8x128xi32>
    %cst_29 = arith.constant 0.000000e+00 : f32
    %54 = vector.broadcast %cst_29 : f32 to vector<8x128xf32>
    %55 = arith.select %53, %35, %54 : vector<8x128xi1>, vector<8x128xf32>
    %cst_30 = arith.constant dense<0.000000e+00> : vector<8xf32>
    %56 = vector.multi_reduction <add>, %55, %cst_30 [1] : vector<8x128xf32> to vector<8xf32>
    %57 = vector.shape_cast %56 : vector<8xf32> to vector<8x1xf32>
    %58 = vector.broadcast %57 : vector<8x1xf32> to vector<8x128xf32>
    %59 = arith.addf %35, %58 : vector<8x128xf32>
    %c0_31 = arith.constant 0 : index
    %c0_32 = arith.constant 0 : index
    %60 = vector.load %arg10[%c0_31, %c0_32] : memref<8x128xf32, #tpu.memory_space<vmem>>, vector<8x128xf32>
    tpu.vector_store %arg10[%c0_31, %c0_32], %59 {strides = array<i32>} : memref<8x128xf32, #tpu.memory_space<vmem>>, vector<8x128xf32>,
    %61 = tpu.iota {dimensions = array<i32: 0>} : vector<8x128xi32>
    %62 = tpu.iota {dimensions = array<i32: 1>} : vector<8x128xi32>
    %c0_i32 = arith.constant 0 : i32
    %63 = vector.broadcast %c0_i32 : i32 to vector<8x128xi32>
    %64 = arith.cmpi eq, %61, %63 : vector<8x128xi32>
    %c0_i32_33 = arith.constant 0 : i32
    %65 = vector.broadcast %c0_i32_33 : i32 to vector<8x128xi32>
    %66 = arith.cmpi eq, %62, %65 : vector<8x128xi32>
    %67 = arith.andi %64, %66 : vector<8x128xi1>
    %cst_34 = arith.constant 0.000000e+00 : f32
    %68 = vector.broadcast %51 : f32 to vector<8x128xf32>
    %69 = vector.broadcast %cst_34 : f32 to vector<8x128xf32>
    %70 = arith.select %67, %68, %69 : vector<8x128xi1>, vector<8x128xf32>
    %c0_35 = arith.constant 0 : index
    %c0_36 = arith.constant 0 : index
    %71 = vector.load %arg11[%c0_35, %c0_36] : memref<8x128xf32, #tpu.memory_space<vmem>>, vector<8x128xf32>
    tpu.vector_store %arg11[%c0_35, %c0_36], %70 {strides = array<i32>} : memref<8x128xf32, #tpu.memory_space<vmem>>, vector<8x128xf32>,
    return
  }
  func.func @transform_0(%arg0: i32) -> (i32, i32) {
    %c0_i32 = arith.constant 0 : i32
    %c0_i32_0 = arith.constant 0 : i32
    return %arg0, %c0_i32 : i32, i32
  }
  func.func @transform_1(%arg0: i32) -> (i32, i32) {
    %c0_i32 = arith.constant 0 : i32
    %c0_i32_0 = arith.constant 0 : i32
    %c0_i32_1 = arith.constant 0 : i32
    return %c0_i32, %c0_i32_0 : i32, i32
  }
  func.func @transform_2(%arg0: i32) -> (i32, i32) {
    %c0_i32 = arith.constant 0 : i32
    %c0_i32_0 = arith.constant 0 : i32
    %c0_i32_1 = arith.constant 0 : i32
    return %c0_i32, %c0_i32_0 : i32, i32
  }
  func.func @transform_3(%arg0: i32) -> (i32, i32) {
    %c0_i32 = arith.constant 0 : i32
    %c0_i32_0 = arith.constant 0 : i32
    %c0_i32_1 = arith.constant 0 : i32
    return %c0_i32, %c0_i32_0 : i32, i32
  }
  func.func @transform_4(%arg0: i32) -> (i32, i32) {
    %c0_i32 = arith.constant 0 : i32
    %c0_i32_0 = arith.constant 0 : i32
    %c0_i32_1 = arith.constant 0 : i32
    return %c0_i32, %c0_i32_0 : i32, i32
  }
  func.func @transform_5(%arg0: i32) -> (i32, i32) {
    %c0_i32 = arith.constant 0 : i32
    %c0_i32_0 = arith.constant 0 : i32
    %c0_i32_1 = arith.constant 0 : i32
    return %c0_i32, %c0_i32_0 : i32, i32
  }
  func.func @transform_6(%arg0: i32) -> (i32, i32) {
    %c0_i32 = arith.constant 0 : i32
    %c0_i32_0 = arith.constant 0 : i32
    %c0_i32_1 = arith.constant 0 : i32
    return %c0_i32, %c0_i32_0 : i32, i32
  }
  func.func @transform_7(%arg0: i32) -> (i32, i32) {
    %c0_i32 = arith.constant 0 : i32
    %c0_i32_0 = arith.constant 0 : i32
    %c0_i32_1 = arith.constant 0 : i32
    return %c0_i32, %c0_i32_0 : i32, i32
  }
  func.func @transform_8(%arg0: i32) -> (i32, i32) {
    %c0_i32 = arith.constant 0 : i32
    %c0_i32_0 = arith.constant 0 : i32
    %c0_i32_1 = arith.constant 0 : i32
    return %c0_i32, %c0_i32_0 : i32, i32
  }
  func.func @transform_9(%arg0: i32) -> (i32, i32) {
    %c0_i32 = arith.constant 0 : i32
    %c0_i32_0 = arith.constant 0 : i32
    return %arg0, %c0_i32 : i32, i32
  }
  func.func @transform_10(%arg0: i32) -> (i32, i32) {
    %c0_i32 = arith.constant 0 : i32
    %c0_i32_0 = arith.constant 0 : i32
    return %arg0, %c0_i32 : i32, i32
  }
}

</mosaic_0001>

<bundles_post_ra>
// kernel: tpu_custom_call.1
= control target key start
LH: loop header
LB: loop body
LE: loop exit
PB: predicated region body
PF: predicated region fallthrough
CT: control target
= control target key end

     0   :  { %16 = vsyncpa [#allocation3], 0  ;;  %s1180_s0 = inlined_call_operand.hbm [shape: f32[8,64], index: 0, kind: input, shape index: {}]   ;;  %s1181_s1 = inlined_call_operand.hbm [shape: f32[64,128], index: 1, kind: input, shape index: {}]   ;;  %s1182_s2 = inlined_call_operand.vmem [shape: f32[1,128], index: 2, kind: input, shape index: {}]   ;;  %s1183_s3 = inlined_call_operand.hbm [shape: f32[128,256], index: 3, kind: input, shape index: {}]   ;;  %s1184_s4 = inlined_call_operand.vmem [shape: f32[1,256], index: 4, kind: input, shape index: {}]   ;;  %s1185_s5 = inlined_call_operand.hbm [shape: f32[256,128], index: 5, kind: input, shape index: {}]   ;;  %s1186_s6 = inlined_call_operand.vmem [shape: f32[1,128], index: 6, kind: input, shape index: {}]   ;;  %s1187_s7 = inlined_call_operand.hbm [shape: f32[128,128], index: 7, kind: input, shape index: {}]   ;;  %s1188_s8 = inlined_call_operand.vmem [shape: f32[1,128], index: 8, kind: input, shape index: {}]   ;;  %s1189_s9 = inlined_call_operand.hbm [shape: f32[8,128], index: 9, kind: output, shape index: {0}]   ;;  %s1190_s10 = inlined_call_operand.hbm [shape: f32[8,128], index: 10, kind: output, shape index: {1}]  }
   0x1   :  { %17 = vsyncpa [#allocation6], 0 }
   0x2   :  { %18 = vsyncpa [#allocation9], 0 }
   0x3   :  { %19 = vsyncpa [#allocation4], 0 }
   0x4   :  { %20 = vsyncpa [#allocation13], 0  ;;  %s983_s13 = smov [#allocation5]   ;;  %s819_s17 = scalar_lea.hbm %s1181_s1, 1024 }
   0x5   :  { %s36_s14 = sshll.u32 %s983_s13, 4  ;;  %p820_p0 = scmp.ne.s32.totalorder %s1181_s1, %s819_s17  ;;  %s37_s14 = int_to_ptr.vmem [resolvable:$true] %s36_s14 }
   0x6   :  { %p823_p1 = scmp.lt.u32.totalorder %s819_s17, %s1181_s1 }
   0x8   :  { %p825_p2 = pnand %p823_p1, %p820_p0 }
   0xa   :  { %828 = shalt.err (!%p825_p2)
}
   0xb   :  { %s829_s22 = scalar_lea.vmem %s37_s14, 1024  ;;  %p834_p4 = scmp.lt.s32.totalorder %s37_s14, %s37_s14 }
   0xc   :  { %p830_p3 = scmp.ne.s32.totalorder %s37_s14, %s829_s22  ;;  %p835_p5 = scmp.lt.s32.totalorder %s829_s22, %s829_s22 }
   0xe   :  { %p836_p6 = por %p835_p5, %p834_p4 }
  0x10   :  { %p837_p7 = pnand %p836_p6, %p830_p3 }
  0x12   :  { %840 = shalt.err (!%p837_p7)
}
  0x13   :  { %s984_s23 = smov 128   ;;  %s985_s24 = smov 8  }
  0x14   :  { %42 = dma.hbm_to_vmem [thread:$0]  %s1181_s1, 1024, %s37_s14, [#allocation6], %s984_s23, %s984_s23, %s985_s24  }
  0x15   :  { %s986_s27 = smov [#allocation8]   ;;  %s987_s29 = smov [#allocation2]  }
  0x16   :  { %s64_s28 = sshll.u32 %s986_s27, 4  ;;  %s27_s30 = sshll.u32 %s987_s29, 4  ;;  %s65_s28 = int_to_ptr.vmem [resolvable:$true] %s64_s28  ;;  %s28_s30 = int_to_ptr.vmem [resolvable:$true] %s27_s30 }
  0x17   :  { %s841_s13 = scalar_lea.hbm %s1185_s5, 4096 }
  0x18   :  { %p842_p8 = scmp.ne.s32.totalorder %s1185_s5, %s841_s13  ;;  %p845_p9 = scmp.lt.u32.totalorder %s841_s13, %s1185_s5 }
  0x1a   :  { %p847_p10 = pnand %p845_p9, %p842_p8 }
  0x1c   :  { %850 = shalt.err (!%p847_p10)
}
  0x1d   :  { %s851_s1 = scalar_lea.vmem %s65_s28, 4096  ;;  %p856_p12 = scmp.lt.s32.totalorder %s65_s28, %s65_s28 }
  0x1e   :  { %p852_p11 = scmp.ne.s32.totalorder %s65_s28, %s851_s1  ;;  %p857_p13 = scmp.lt.s32.totalorder %s851_s1, %s851_s1 }
  0x20   :  { %p858_p0 = por %p857_p13, %p856_p12 }
  0x22   :  { %p859_p1 = pnand %p858_p0, %p852_p11 }
  0x24   :  { %862 = shalt.err (!%p859_p1)
}
  0x25   :  { %70 = dma.hbm_to_vmem [thread:$0]  %s1185_s5, 4096, %s65_s28, [#allocation9], %s984_s23, %s984_s23, %s985_s24  }
  0x26   :  { %s863_s22 = scalar_lea.hbm %s1180_s0, 128 }
  0x27   :  { %p864_p2 = scmp.ne.s32.totalorder %s1180_s0, %s863_s22  ;;  %p867_p3 = scmp.lt.u32.totalorder %s863_s22, %s1180_s0 }
  0x29   :  { %p869_p4 = pnand %p867_p3, %p864_p2 }
  0x2b   :  { %872 = shalt.err (!%p869_p4)
}
  0x2c   :  { %s873_s11 = scalar_lea.vmem %s28_s30, 128  ;;  %p878_p6 = scmp.lt.s32.totalorder %s28_s30, %s28_s30 }
  0x2d   :  { %p874_p5 = scmp.ne.s32.totalorder %s28_s30, %s873_s11  ;;  %p879_p7 = scmp.lt.s32.totalorder %s873_s11, %s873_s11 }
  0x2f   :  { %p880_p8 = por %p879_p7, %p878_p6 }
  0x31   :  { %p881_p9 = pnand %p880_p8, %p874_p5 }
  0x33   :  { %884 = shalt.err (!%p881_p9)
}
  0x34   :  { %30 = dma.hbm_to_vmem [thread:$0]  %s1180_s0, 128, %s28_s30, [#allocation3]  }
  0x35   :  { %s988_s12 = smov [#allocation7]   ;;  %s885_s17 = scalar_lea.hbm %s1183_s3, 4096 }
  0x36   :  { %s50_s13 = sshll.u32 %s988_s12, 4  ;;  %p886_p10 = scmp.ne.s32.totalorder %s1183_s3, %s885_s17  ;;  %s51_s13 = int_to_ptr.vmem [resolvable:$true] %s50_s13 }
  0x37   :  { %p889_p11 = scmp.lt.u32.totalorder %s885_s17, %s1183_s3 }
  0x39   :  { %p891_p12 = pnand %p889_p11, %p886_p10 }
  0x3b   :  { %894 = shalt.err (!%p891_p12)
}
  0x3c   :  { %s895_s20 = scalar_lea.vmem %s51_s13, 4096  ;;  %p900_p0 = scmp.lt.s32.totalorder %s51_s13, %s51_s13 }
  0x3d   :  { %p896_p13 = scmp.ne.s32.totalorder %s51_s13, %s895_s20  ;;  %p901_p1 = scmp.lt.s32.totalorder %s895_s20, %s895_s20 }
  0x3f   :  { %p902_p2 = por %p901_p1, %p900_p0 }
  0x41   :  { %p903_p3 = pnand %p902_p2, %p896_p13 }
  0x43   :  { %906 = shalt.err (!%p903_p3)
}
  0x44   :  { %s989_s0 = smov 256   ;;  %s990_s30 = smov 16  }
  0x45   :  { %56 = dma.hbm_to_vmem [thread:$0]  %s1183_s3, 4096, %s51_s13, [#allocation6], %s989_s0, %s989_s0, %s990_s30  }
  0x46   :  { %s991_s25 = smov [#allocation10]   ;;  %s907_s11 = scalar_lea.hbm %s1187_s7, 2048 }
  0x47   :  { %s78_s26 = sshll.u32 %s991_s25, 4  ;;  %p908_p4 = scmp.ne.s32.totalorder %s1187_s7, %s907_s11  ;;  %s79_s26 = int_to_ptr.vmem [resolvable:$true] %s78_s26 }
  0x48   :  { %p911_p5 = scmp.lt.u32.totalorder %s907_s11, %s1187_s7 }
  0x4a   :  { %p913_p6 = pnand %p911_p5, %p908_p4 }
  0x4c   :  { %916 = shalt.err (!%p913_p6)
}
  0x4d   :  { %s917_s16 = scalar_lea.vmem %s79_s26, 2048  ;;  %p922_p8 = scmp.lt.s32.totalorder %s79_s26, %s79_s26 }
  0x4e   :  { %p918_p7 = scmp.ne.s32.totalorder %s79_s26, %s917_s16  ;;  %p923_p9 = scmp.lt.s32.totalorder %s917_s16, %s917_s16 }
  0x50   :  { %p924_p10 = por %p923_p9, %p922_p8 }
  0x52   :  { %p925_p11 = pnand %p924_p10, %p918_p7 }
  0x54   :  { %928 = shalt.err (!%p925_p11)
}
  0x55   :  { %84 = dma.hbm_to_vmem [thread:$0]  %s1187_s7, 2048, %s79_s26, [#allocation9], %s984_s23, %s984_s23, %s985_s24  }
  0x56   :  { %973 = dma.done.wait [#allocation3], 128  }
  0x57   :  { %974 = vsyncadd [#allocation3], 4294967168 }
  0x58   :  { %975 = dma.done.wait [#allocation6], 5120  }
  0x59   :  { %976 = vsyncadd [#allocation6], 4294962176 }
  0x5a   :  { %977 = dma.done.wait [#allocation9], 6144  }
  0x5b   :  { %978 = vsyncadd [#allocation9], 4294961152  ;;  %v992_v0 = vmov 0.0|0.0   ;;  %vm993_vm0 = vmmov 0   ;;  %v994_v1 = vmov 0.0   ;;  %v103_v2 = vld [vmem:[#allocation5] sm:$0xff] }
  0x5c   :  { %703 = vmatprep.subr.bf16.mxu0 %v992_v0  ;;  %665 = vmatprep.mubr.msk.f32.mxu0 %vm993_vm0, %v994_v1  ;;  %v104_v3 = vld [vmem:[#allocation5 + $0x8] sm:$0xff]  ;;  %v105_v4 = vld [vmem:[#allocation5 + $0x10] sm:$0xff]  ;;  %v106_v6 = vld [vmem:[#allocation5 + $0x18] sm:$0xff]  ;;  %vm118_vm1 = vcmask 523264  }
  0x5d   :  { %303 = vmatprep.mubr.f32.mxu1 %v994_v1  ;;  %v704_v5 = vpack.c.bf16 %v104_v3, %v103_v2  ;;  %v107_v7 = vld [vmem:[#allocation5 + $0x20] sm:$0xff]  ;;  %v108_v8 = vld [vmem:[#allocation5 + $0x28] sm:$0xff]  ;;  %v707_v9 = vpack.c.bf16 %v106_v6, %v105_v4  ;;  %v198_v11 = vld [vmem:[#allocation7 + $0x18] sm:$0xff] }
  0x5e   :  { %v196_v10 = vld [vmem:[#allocation7 + $0x8] sm:$0xff]  ;;  %v195_v12 = vld [vmem:[#allocation7] sm:$0xff]  ;;  %v197_v14 = vld [vmem:[#allocation7 + $0x10] sm:$0xff]  ;;  %v710_v23 = vpack.c.bf16 %v108_v8, %v107_v7 }
  0x5f   :  { %705 = vmatpush3.bf16.msra.mxu0 %v704_v5  ;;  %v715_v13 = vpack.c.bf16 %v198_v11, %v196_v10  ;;  %v200_v15 = vld [vmem:[#allocation7 + $0x28] sm:$0xff]  ;;  %v202_v16 = vld [vmem:[#allocation7 + $0x38] sm:$0xff]  ;;  %v717_v17 = vpack.c.bf16 %v197_v14, %v195_v12  ;;  %v199_v19 = vld [vmem:[#allocation7 + $0x20] sm:$0xff] }
  0x60   :  { %706 = vmatprep.subr.bf16.mxu0 %v992_v0  ;;  %v719_v18 = vpack.c.bf16 %v202_v16, %v200_v15  ;;  %v201_v20 = vld [vmem:[#allocation7 + $0x30] sm:$0xff]  ;;  %v204_v21 = vld [vmem:[#allocation7 + $0x48] sm:$0xff]  ;;  %v206_v22 = vld [vmem:[#allocation7 + $0x58] sm:$0xff] }
  0x61   :  { %716 = vmatprep.subr.bf16.mxu1 %v715_v13  ;;  %v109_v24 = vld [vmem:[#allocation5 + $0x30] sm:$0xff]  ;;  %v721_v25 = vpack.c.bf16 %v201_v20, %v199_v19  ;;  %v110_v26 = vld [vmem:[#allocation5 + $0x38] sm:$0xff]  ;;  %v723_v27 = vpack.c.bf16 %v206_v22, %v204_v21  ;;  %v203_v28 = vld [vmem:[#allocation7 + $0x40] sm:$0xff] }
  0x62   :  { %718 = vmatpush1.bf16.msra.mxu1 %v717_v17  ;;  %v205_v29 = vld [vmem:[#allocation7 + $0x50] sm:$0xff]  ;;  %v208_v30 = vld [vmem:[#allocation7 + $0x68] sm:$0xff]  ;;  %v210_v31 = vld [vmem:[#allocation7 + $0x78] sm:$0xff]  ;;  %v713_v32 = vpack.c.bf16 %v110_v26, %v109_v24 }
  0x63   :  { %708 = vmatpush3.bf16.msra.mxu0 %v707_v9  ;;  %720 = vmatprep.subr.bf16.mxu1 %v719_v18  ;;  %v725_v33 = vpack.c.bf16 %v205_v29, %v203_v28  ;;  %v727_v34 = vpack.c.bf16 %v210_v31, %v208_v30  ;;  %v207_v35 = vld [vmem:[#allocation7 + $0x60] sm:$0xff]  ;;  %v209_v36 = vld [vmem:[#allocation7 + $0x70] sm:$0xff]  ;;  %v212_v37 = vld [vmem:[#allocation7 + $0x88] sm:$0xff] }
  0x64   :  { %709 = vmatprep.subr.bf16.mxu0 %v992_v0  ;;  %v214_v38 = vld [vmem:[#allocation7 + $0x98] sm:$0xff]  ;;  %v729_v40 = vpack.c.bf16 %v209_v36, %v207_v35  ;;  %v211_v42 = vld [vmem:[#allocation7 + $0x80] sm:$0xff]  ;;  %v213_v43 = vld [vmem:[#allocation7 + $0x90] sm:$0xff] }
  0x65   :  { %v102_v39 = vld [vmem:[#allocation2] sm:$0xff]  ;;  %v731_v41 = vpack.c.bf16 %v214_v38, %v212_v37  ;;  %v216_v44 = vld [vmem:[#allocation7 + $0xa8] sm:$0xff]  ;;  %v733_v46 = vpack.c.bf16 %v213_v43, %v211_v42  ;;  %v215_v48 = vld [vmem:[#allocation7 + $0xa0] sm:$0xff] }
  0x66   :  { %722 = vmatpush1.bf16.msra.mxu1 %v721_v25  ;;  %v218_v45 = vld [vmem:[#allocation7 + $0xb8] sm:$0xff]  ;;  %v217_v49 = vld [vmem:[#allocation7 + $0xb0] sm:$0xff]  ;;  %v220_v50 = vld [vmem:[#allocation7 + $0xc8] sm:$0xff] }
  0x67   :  { %711 = vmatpush3.bf16.msra.mxu0 %v710_v23  ;;  %724 = vmatprep.subr.bf16.mxu1 %v723_v27  ;;  %v735_v47 = vpack.c.bf16 %v218_v45, %v216_v44  ;;  %v222_v51 = vld [vmem:[#allocation7 + $0xd8] sm:$0xff]  ;;  %v737_v52 = vpack.c.bf16 %v217_v49, %v215_v48  ;;  %v219_v54 = vld [vmem:[#allocation7 + $0xc0] sm:$0xff]  ;;  %v221_v55 = vld [vmem:[#allocation7 + $0xd0] sm:$0xff] }
  0x68   :  { %712 = vmatprep.subr.bf16.mxu0 %v992_v0  ;;  %v739_v53 = vpack.c.bf16 %v222_v51, %v220_v50  ;;  %v741_v56 = vpack.c.bf16 %v221_v55, %v219_v54  ;;  %v224_v57 = vld [vmem:[#allocation7 + $0xe8] sm:$0xff]  ;;  %v226_v58 = vld [vmem:[#allocation7 + $0xf8] sm:$0xff]  ;;  %v223_v60 = vld [vmem:[#allocation7 + $0xe0] sm:$0xff] }
  0x69   :  { %v743_v59 = vpack.c.bf16 %v226_v58, %v224_v57  ;;  %v225_v61 = vld [vmem:[#allocation7 + $0xf0] sm:$0xff]  ;;  %v332_v63 = vld [vmem:[#allocation8 + $0x80] sm:$0xff]  ;;  %v333_v2 = vld [vmem:[#allocation8 + $0x88] sm:$0xff] }
  0x6a   :  { %726 = vmatpush1.bf16.msra.mxu1 %v725_v33  ;;  %v745_v62 = vpack.c.bf16 %v225_v61, %v223_v60  ;;  %v316_v3 = vld [vmem:[#allocation8] sm:$0xff]  ;;  %v747_v4 = vpack.c.bf16 %v333_v2, %v332_v63  ;;  %v317_v5 = vld [vmem:[#allocation8 + $0x8] sm:$0xff]  ;;  %v334_v6 = vld [vmem:[#allocation8 + $0x90] sm:$0xff] }
  0x6b   :  { %714 = vmatpush3.bf16.msra.mxu0 %v713_v32  ;;  %728 = vmatprep.subr.bf16.mxu1 %v727_v34  ;;  %v335_v7 = vld [vmem:[#allocation8 + $0x98] sm:$0xff]  ;;  %v749_v8 = vpack.c.bf16 %v317_v5, %v316_v3  ;;  %v318_v10 = vld [vmem:[#allocation8 + $0x10] sm:$0xff]  ;;  %v336_v12 = vld [vmem:[#allocation8 + $0xa0] sm:$0xff] }
  0x6c   :  { %v751_v9 = vpack.c.bf16 %v335_v7, %v334_v6  ;;  %v319_v11 = vld [vmem:[#allocation8 + $0x18] sm:$0xff]  ;;  %748 = vmatprep.subr.bf16.mxu0 %v747_v4  ;;  %v337_v13 = vld [vmem:[#allocation8 + $0xa8] sm:$0xff]  ;;  %v320_v16 = vld [vmem:[#allocation8 + $0x20] sm:$0xff] }
  0x6d   :  { %v753_v14 = vpack.c.bf16 %v319_v11, %v318_v10  ;;  %v755_v15 = vpack.c.bf16 %v337_v13, %v336_v12  ;;  %v321_v17 = vld [vmem:[#allocation8 + $0x28] sm:$0xff]  ;;  %v338_v18 = vld [vmem:[#allocation8 + $0xb0] sm:$0xff]  ;;  %v339_v19 = vld [vmem:[#allocation8 + $0xb8] sm:$0xff]  ;;  %v229_v10 = vlaneseq }
  0x6e   :  { %666 = vmatmul.mubr.msk.f32.vlgmr.msra.gmra.mrb[0].mxu0 %vm118_vm1, %v102_v39  ;;  %730 = vmatpush1.bf16.msra.mxu1 %v729_v40  ;;  %v757_v20 = vpack.c.bf16 %v321_v17, %v320_v16  ;;  %v759_v21 = vpack.c.bf16 %v339_v19, %v338_v18  ;;  %v322_v22 = vld [vmem:[#allocation8 + $0x30] sm:$0xff]  ;;  %v323_v23 = vld [vmem:[#allocation8 + $0x38] sm:$0xff]  ;;  %v340_v24 = vld [vmem:[#allocation8 + $0xc0] sm:$0xff] }
  0x6f   :  { %732 = vmatprep.subr.bf16.mxu1 %v731_v41  ;;  %750 = vmatpush3.bf16.msra.mxu0 %v749_v8  ;;  %v341_v25 = vld [vmem:[#allocation8 + $0xc8] sm:$0xff]  ;;  %v761_v26 = vpack.c.bf16 %v323_v23, %v322_v22  ;;  %v324_v28 = vld [vmem:[#allocation8 + $0x40] sm:$0xff]  ;;  %v342_v30 = vld [vmem:[#allocation8 + $0xd0] sm:$0xff]  ;;  %v1140_v11 = vshrl.u32 %v229_v10, 7 }
  0x70   :  { %752 = vmatprep.subr.bf16.mxu0 %v751_v9  ;;  %v763_v27 = vpack.c.bf16 %v341_v25, %v340_v24  ;;  %v325_v29 = vld [vmem:[#allocation8 + $0x48] sm:$0xff]  ;;  %v343_v31 = vld [vmem:[#allocation8 + $0xd8] sm:$0xff]  ;;  %v326_v34 = vld [vmem:[#allocation8 + $0x50] sm:$0xff] }
  0x71   :  { %v765_v32 = vpack.c.bf16 %v325_v29, %v324_v28  ;;  %v767_v33 = vpack.c.bf16 %v343_v31, %v342_v30  ;;  %v327_v35 = vld [vmem:[#allocation8 + $0x58] sm:$0xff]  ;;  %v344_v43 = vld [vmem:[#allocation8 + $0xe0] sm:$0xff]  ;;  %v345_v44 = vld [vmem:[#allocation8 + $0xe8] sm:$0xff]  ;;  %v231_v12 = vsub.s32 0, %v1140_v11  ;;  %vm529_vm7 = vcmp.lt.s32.totalorder %v1140_v11, 2 }
  0x72   :  { %734 = vmatpush1.bf16.msra.mxu1 %v733_v46  ;;  %v769_v36 = vpack.c.bf16 %v327_v35, %v326_v34  ;;  %v584_v37 = vld [vmem:[%s1182_s2] ss:$0 sm:$0xff]  ;;  %v771_v45 = vpack.c.bf16 %v345_v44, %v344_v43  ;;  %v328_v46 = vld [vmem:[#allocation8 + $0x60] sm:$0xff]  ;;  %v346_v49 = vld [vmem:[#allocation8 + $0xf0] sm:$0xff] }
  0x73   :  { %736 = vmatprep.subr.bf16.mxu1 %v735_v47  ;;  %754 = vmatpush3.bf16.msra.mxu0 %v753_v14  ;;  %v329_v47 = vld [vmem:[#allocation8 + $0x68] sm:$0xff]  ;;  %v347_v50 = vld [vmem:[#allocation8 + $0xf8] sm:$0xff]  ;;  %v428_v55 = vld [vmem:[#allocation10] sm:$0xff]  ;;  %v235_v14 = vsub.s32 1, %v1140_v11 }
  0x74   :  { %756 = vmatprep.subr.bf16.mxu0 %v755_v15  ;;  %v773_v48 = vpack.c.bf16 %v329_v47, %v328_v46  ;;  %v775_v51 = vpack.c.bf16 %v347_v50, %v346_v49  ;;  %v430_v57 = vld [vmem:[#allocation10 + $0x10] sm:$0xff]  ;;  %v431_v58 = vld [vmem:[#allocation10 + $0x18] sm:$0xff]  ;;  %v432_v60 = vld [vmem:[#allocation10 + $0x20] sm:$0xff] }
  0x75   :  { %v433_v61 = vld [vmem:[#allocation10 + $0x28] sm:$0xff]  ;;  %v434_v63 = vld [vmem:[#allocation10 + $0x30] sm:$0xff]  ;;  %v435_v2 = vld [vmem:[#allocation10 + $0x38] sm:$0xff] }
  0x76   :  { %738 = vmatpush1.bf16.msra.mxu1 %v737_v52  ;;  %v330_v52 = vld [vmem:[#allocation8 + $0x70] sm:$0xff]  ;;  %v789_v3 = vpack.c.bf16 %v435_v2, %v434_v63  ;;  %v436_v4 = vld [vmem:[#allocation10 + $0x40] sm:$0xff]  ;;  %v437_v5 = vld [vmem:[#allocation10 + $0x48] sm:$0xff] }
  0x77   :  { %740 = vmatprep.subr.bf16.mxu1 %v739_v53  ;;  %758 = vmatpush3.bf16.msra.mxu0 %v757_v20  ;;  %v331_v53 = vld [vmem:[#allocation8 + $0x78] sm:$0xff]  ;;  %v792_v6 = vpack.c.bf16 %v437_v5, %v436_v4  ;;  %v438_v7 = vld [vmem:[#allocation10 + $0x50] sm:$0xff]  ;;  %v440_v25 = vld [vmem:[#allocation10 + $0x60] sm:$0xff] }
  0x78   :  { %760 = vmatprep.subr.bf16.mxu0 %v759_v21  ;;  %v777_v54 = vpack.c.bf16 %v331_v53, %v330_v52  ;;  %v439_v8 = vld [vmem:[#allocation10 + $0x58] sm:$0xff]  ;;  %v442_v28 = vld [vmem:[#allocation10 + $0x70] sm:$0xff] }
  0x79   :  { %v795_v9 = vpack.c.bf16 %v439_v8, %v438_v7  ;;  %v227_v13 = vld [vmem:[%s1184_s4] sm:$0x3] }
  0x7a   :  { %742 = vmatpush1.bf16.msra.mxu1 %v741_v56  ;;  %v429_v56 = vld [vmem:[#allocation10 + $0x8] sm:$0xff]  ;;  %v232_v15 = vrot.slane %v227_v13, %v231_v12  ;;  %v236_v16 = vrot.slane %v227_v13, %v235_v14  ;;  %v443_v29 = vld [vmem:[#allocation10 + $0x78] sm:$0xff] }
  0x7b   :  { %744 = vmatprep.subr.bf16.mxu1 %v743_v59  ;;  %762 = vmatpush3.bf16.msra.mxu0 %v761_v26  ;;  %v783_v59 = vpack.c.bf16 %v431_v58, %v430_v57  ;;  %v441_v26 = vld [vmem:[#allocation10 + $0x68] sm:$0xff]  ;;  %v801_v30 = vpack.c.bf16 %v443_v29, %v442_v28 }
  0x7c   :  { %764 = vmatprep.subr.bf16.mxu0 %v763_v27  ;;  %v798_v27 = vpack.c.bf16 %v441_v26, %v440_v25 }
  0x7e   :  { %746 = vmatpush1.bf16.msra.mxu1 %v745_v62  ;;  %v786_v62 = vpack.c.bf16 %v433_v61, %v432_v60 }
  0x7f   :  { %779 = vmatprep.subr.bf16.mxu1 %v992_v0  ;;  %766 = vmatpush3.bf16.msra.mxu0 %v765_v32  ;;  %v586_v32 = vld [vmem:[%s1186_s6] ss:$0 sm:$0xff]  ;;  %s995_s6 = smov [#allocation11]  }
  0x80   :  { %768 = vmatprep.subr.bf16.mxu0 %v767_v33  ;;  %s559_s14 = sshll.u32 %s995_s6, 4  ;;  %s560_s14 = int_to_ptr.vmem [resolvable:$true] %s559_s14 }
  0x81   :  { %p934_p13 = scmp.lt.s32.totalorder %s560_s14, %s560_s14 }
  0x83   :  { %770 = vmatpush3.bf16.msra.mxu0 %v769_v36 }
  0x84   :  { %772 = vmatprep.subr.bf16.mxu0 %v771_v45 }
  0x87   :  { %774 = vmatpush3.bf16.msra.mxu0 %v773_v48 }
  0x88   :  { %776 = vmatprep.subr.bf16.mxu0 %v775_v51 }
  0x8b   :  { %778 = vmatpush3.bf16.msra.mxu0 %v777_v54 }
 0x141   :  { %v188_v38 = vpop.f32.mrb[0].mxu0 }
 0x142   :  { %v189_v39 = vadd.f32 %v584_v37, %v188_v38  ;;  %v667_v40 = vpop.f32.mrb[1].mxu0  ;;  %v522_v38 = vand.u32 127, %v229_v10 }
 0x144   :  { %v193_v41 = vmul.f32 0.01, %v189_v39  ;;  %vm192_vm2 = vcmp.gt.f32.partialorder %v189_v39, 0.0  ;;  %vm525_vm6 = vcmp.lt.s32.totalorder %v522_v38, 65  ;;  %vm541_vm9 = vcmp.eq.s32.totalorder %v522_v38, 65 }
 0x145   :  { %vm530_vm8 = vmand %vm525_vm6, %vm529_vm7 }
 0x146   :  { %v194_v42 = vsel %vm192_vm2, %v189_v39, %v193_v41 }
 0x147   :  { %304 = vmatmul.mubr.f32.vlgmr.msra.gmra.mrb[0].mxu1 %v194_v42 }
 0x148   :  { %700 = vmatprep.mubr.msk.f32.mxu1 %vm993_vm0, %v994_v1  ;;  %v780_v1 = vpack.c.bf16 %v429_v56, %v428_v55 }
 0x14a   :  { %781 = vmatpush3.bf16.msra.mxu1 %v780_v1 }
 0x14b   :  { %782 = vmatprep.subr.bf16.mxu1 %v992_v0 }
 0x14e   :  { %784 = vmatpush3.bf16.msra.mxu1 %v783_v59 }
 0x14f   :  { %785 = vmatprep.subr.bf16.mxu1 %v992_v0 }
 0x152   :  { %787 = vmatpush3.bf16.msra.mxu1 %v786_v62 }
 0x153   :  { %788 = vmatprep.subr.bf16.mxu1 %v992_v0 }
 0x156   :  { %790 = vmatpush3.bf16.msra.mxu1 %v789_v3 }
 0x157   :  { %791 = vmatprep.subr.bf16.mxu1 %v992_v0 }
 0x15a   :  { %793 = vmatpush3.bf16.msra.mxu1 %v792_v6 }
 0x15b   :  { %794 = vmatprep.subr.bf16.mxu1 %v992_v0 }
 0x15e   :  { %796 = vmatpush3.bf16.msra.mxu1 %v795_v9 }
 0x15f   :  { %797 = vmatprep.subr.bf16.mxu1 %v992_v0 }
 0x162   :  { %799 = vmatpush3.bf16.msra.mxu1 %v798_v27 }
 0x163   :  { %800 = vmatprep.subr.bf16.mxu1 %v992_v0  ;;  %v587_v0 = vld [vmem:[%s1188_s8] ss:$0 sm:$0xff]  ;;  %s929_s8 = scalar_lea.vmem %s560_s14, 128 }
 0x164   :  { %p930_p12 = scmp.ne.s32.totalorder %s560_s14, %s929_s8  ;;  %p935_p0 = scmp.lt.s32.totalorder %s929_s8, %s929_s8 }
 0x166   :  { %802 = vmatpush3.bf16.msra.mxu1 %v801_v30  ;;  %p936_p1 = por %p935_p0, %p934_p13 }
 0x168   :  { %p937_p2 = pnand %p936_p1, %p930_p12 }
 0x21a   :  { %v305_v17 = vpop.f32.mrb[0].mxu1 }
 0x21b   :  { %v306_v18 = vadd.f32 %v305_v17, %v232_v15  ;;  %v307_v19 = vpop.f32.mrb[1].mxu1 }
 0x21c   :  { %v308_v20 = vadd.f32 %v307_v19, %v236_v16 }
 0x21d   :  { %v312_v21 = vmul.f32 0.01, %v306_v18  ;;  %vm310_vm3 = vcmp.gt.f32.partialorder %v306_v18, 0.0 }
 0x21e   :  { %v313_v22 = vmul.f32 0.01, %v308_v20  ;;  %vm311_vm4 = vcmp.gt.f32.partialorder %v308_v20, 0.0 }
 0x21f   :  { %v314_v24 = vsel %vm310_vm3, %v306_v18, %v312_v21 }
 0x220   :  { %v315_v23 = vsel %vm311_vm4, %v308_v20, %v313_v22 }
 0x221   :  { %419 = vmatprep.mubr.f32.mxu0 %v315_v23 }
 0x222   :  { %420 = vmatmul.mubr.f32.vlgmr.msra.gmra.mrb[2].mxu0 %v314_v24 }
 0x2f5   :  { %v629_v31 = vpop.f32.mrb[2].mxu0 }
 0x2f6   :  { %v630_v33 = vpop.f32.mrb[3].mxu0 }
 0x2f7   :  { %v631_v34 = vadd.f32 %v630_v33, %v629_v31 }
 0x2f9   :  { %v422_v35 = vadd.f32 %v631_v34, %v586_v32 }
 0x2fb   :  { %v426_v36 = vmul.f32 0.01, %v422_v35  ;;  %vm425_vm5 = vcmp.gt.f32.partialorder %v422_v35, 0.0 }
 0x2fd   :  { %v427_v37 = vsel %vm425_vm5, %v422_v35, %v426_v36 }
 0x2fe   :  { %701 = vmatmul.mubr.f32.vlgmr.msra.gmra.mrb[2].mxu1 %v427_v37 }
 0x3d1   :  { %v517_v39 = vpop.f32.mrb[2].mxu1 }
 0x3d2   :  { %v518_v40 = vadd.f32 %v587_v0, %v517_v39  ;;  %v702_v41 = vpop.f32.mrb[3].mxu1 }
 0x3d4   :  { %v531_v42 = vsel %vm530_vm8, %v518_v40, 0.0  ;;  %v542_v43 = vsel %vm541_vm9, %v518_v40, 0.0 }
 0x3d5   :  { %532 = vadd.xlane.f32.xlu0 %v531_v42 }
 0x3d9   :  { %543 = vadd.xlane.f32.xlu0 %v542_v43 }
 0x462   :  { %v533_v44 = vpop.xlane.xlu0 %532 }
 0x463   :  { %v534_v45 = vrot.slane %v533_v44, 4 }
 0x465   :  { %v535_v46 = vadd.f32 %v534_v45, %v533_v44 }
 0x466   :  { %v544_v47 = vpop.xlane.xlu0 %543 }
 0x467   :  { %v536_v48 = vrot.slane %v535_v46, 2  ;;  %v545_v49 = vadd.f32 %v544_v47, %v518_v40 }
 0x469   :  { %546 = vst [vmem:[#allocation11] sm:$0xff] %v545_v49  ;;  %v537_v50 = vadd.f32 %v536_v48, %v535_v46 }
 0x46a   :  { %940 = shalt.err (!%p937_p2)
}
 0x46b   :  { %s941_s0 = scalar_lea.hbm %s1189_s9, 128 }
 0x46c   :  { %p942_p3 = scmp.ne.s32.totalorder %s1189_s9, %s941_s0  ;;  %p945_p4 = scmp.lt.u32.totalorder %s941_s0, %s1189_s9 }
 0x46e   :  { %p947_p5 = pnand %p945_p4, %p942_p3 }
 0x470   :  { %950 = shalt.err (!%p947_p5)
}
 0x471   :  { %562 = dma.vmem_to_hbm [thread:$0]  %s560_s14, 128, %s1189_s9, [#allocation4]   ;;  %v538_v51 = vrot.slane %v537_v50, 1  ;;  %vm547_vm10 = vcmp.eq.s32.totalorder %v1140_v11, 0  ;;  %vm548_vm11 = vcmp.eq.s32.totalorder %v522_v38, 0 }
 0x472   :  { %s996_s29 = smov [#allocation12]   ;;  %vm549_vm12 = vmand %vm547_vm10, %vm548_vm11 }
 0x473   :  { %v539_v52 = vadd.f32 %v538_v51, %v537_v50  ;;  %s569_s11 = sshll.u32 %s996_s29, 4  ;;  %s570_s11 = int_to_ptr.vmem [resolvable:$true] %s569_s11 }
 0x474   :  { %s951_s28 = scalar_lea.vmem %s570_s11, 128  ;;  %p956_p7 = scmp.lt.s32.totalorder %s570_s11, %s570_s11 }
 0x475   :  { %803 = vpush %v539_v52  ;;  %p952_p6 = scmp.ne.s32.totalorder %s570_s11, %s951_s28  ;;  %p957_p8 = scmp.lt.s32.totalorder %s951_s28, %s951_s28 }
 0x477   :  { %p958_p9 = por %p957_p8, %p956_p7 }
 0x479   :  { %p959_p10 = pnand %p958_p9, %p952_p6 }
 0x4a6   :  { %s804_s5 = spop %803 }
 0x4a7   :  { %v550_v53 = vstv %s804_s5 }
 0x4a8   :  { %v551_v54 = vsel %vm549_vm12, %v550_v53, 0.0 }
 0x4a9   :  { %552 = vst [vmem:[#allocation12] sm:$0xff] %v551_v54 }
 0x4aa   :  { %962 = shalt.err (!%p959_p10)
}
 0x4ab   :  { %s963_s15 = scalar_lea.hbm %s1190_s10, 128 }
 0x4ac   :  { %p964_p11 = scmp.ne.s32.totalorder %s1190_s10, %s963_s15  ;;  %p967_p12 = scmp.lt.u32.totalorder %s963_s15, %s1190_s10 }
 0x4ae   :  { %p969_p13 = pnand %p967_p12, %p964_p11 }
 0x4b0   :  { %972 = shalt.err (!%p969_p13)
}
 0x4b1   :  { %572 = dma.vmem_to_hbm [thread:$0]  %s570_s11, 128, %s1190_s10, [#allocation13]  }
 0x4b2   :  { %979 = dma.done.wait [#allocation4], 128  }
 0x4b3   :  { %980 = vsyncadd [#allocation4], 4294967168 }
 0x4b4   :  { %981 = dma.done.wait [#allocation13], 128  }
 0x4b5   :  { %982 = vsyncadd [#allocation13], 4294967168 }
 0x4b6   :  { %579 = vsyncpa [#allocation3], 1 }
 0x4b7   :  { %580 = vsyncpa [#allocation6], 1 }
 0x4b8   :  { %581 = vsyncpa [#allocation9], 1 }
 0x4b9   :  { %582 = vsyncpa [#allocation4], 1 }
 0x4ba   :  { %583 = vsyncpa [#allocation13], 1 }

</bundles_post_ra>
